<compile_context>
chip_gen: v7x
topology: tpu7x:2x2x1
jax: 0.10.0
libtpu: 0.0.40
codegen_flags: <defaults>
</compile_context>

<pallas_src>
import jax
import jax.numpy as jnp
from jax.experimental import pallas as pl
from jax.experimental.pallas import tpu as pltpu

IN_DIM = 784
H1 = 256
H2 = 128
N_CLASSES = 10
PAD_N = 128          # lane-dense padded logits width
NEG_BIG = -1e30      # effective -inf for padded logit columns (exp -> 0)


def mlp_kernel(x_ref, w1_ref, b1_ref, w2_ref, b2_ref, w3_ref, b3_ref, o_ref):
    # x tile (TM, 784) f32 -> bf16 for full-rate MXU; accumulate in f32.
    x = x_ref[...].astype(jnp.bfloat16)

    h1 = jnp.dot(x, w1_ref[...], preferred_element_type=jnp.float32) + b1_ref[...]
    h1 = jnp.maximum(h1, 0.0).astype(jnp.bfloat16)

    h2 = jnp.dot(h1, w2_ref[...], preferred_element_type=jnp.float32) + b2_ref[...]
    h2 = jnp.maximum(h2, 0.0).astype(jnp.bfloat16)

    # w3 is zero-padded to (128, 128) and b3 to (1, 128) with NEG_BIG in the
    # pad columns: full 128-wide MXU pass + lane-dense output store, and the
    # pad columns contribute exp(NEG_BIG - m) == 0 to the softmax sum.
    logits = jnp.dot(h2, w3_ref[...], preferred_element_type=jnp.float32) + b3_ref[...]

    # numerically stable log_softmax along dim=1
    m = jnp.max(logits, axis=1, keepdims=True)
    s = logits - m
    lse = jnp.log(jnp.sum(jnp.exp(s), axis=1, keepdims=True))
    o_ref[...] = s - lse


def _round_up(n, m):
    return ((n + m - 1) // m) * m


def prepare_params(params):
    """One-time parameter prep: bf16 weights, lane-padded final layer."""
    w1, b1, w2, b2, w3, b3 = params
    w1b = w1.astype(jnp.bfloat16)
    w2b = w2.astype(jnp.bfloat16)
    w3p = jnp.zeros((H2, PAD_N), jnp.bfloat16).at[:, :N_CLASSES].set(
        w3.astype(jnp.bfloat16))
    b3p = jnp.full((1, PAD_N), NEG_BIG, jnp.float32).at[:, :N_CLASSES].set(
        b3.astype(jnp.float32))
    return (w1b, b1.astype(jnp.float32), w2b, b2.astype(jnp.float32), w3p, b3p)


def classifier_forward(x, prepped, *, tm=256):
    """x: (B, 1, 28, 28) or (B, 784) float32. Returns (B, 10) log-probs."""
    B = x.shape[0]
    x2d = x.reshape(B, -1).astype(jnp.float32)           # x.view(B, -1)
    w1, b1, w2, b2, w3, b3 = prepped

    # batch tile: multiple of 8 sublanes; pad B up so the grid divides evenly.
    TM = min(tm, _round_up(B, 8))
    Bp = _round_up(B, TM)
    if Bp != B:
        x2d = jnp.pad(x2d, ((0, Bp - B), (0, 0)))
    grid = (Bp // TM,)

    weight_bytes = sum(int(a.size) * a.dtype.itemsize for a in prepped)
    cost = pl.CostEstimate(
        flops=2 * Bp * (IN_DIM * H1 + H1 * H2 + H2 * PAD_N),
        transcendentals=Bp * PAD_N,
        bytes_accessed=Bp * IN_DIM * 4 + weight_bytes + Bp * PAD_N * 4,
    )

    out = pl.pallas_call(
        mlp_kernel,
        out_shape=jax.ShapeDtypeStruct((Bp, PAD_N), jnp.float32),
        grid=grid,
        in_specs=[
            pl.BlockSpec((TM, IN_DIM), lambda i: (i, 0)),   # x: tiled over batch
            pl.BlockSpec(w1.shape, lambda i: (0, 0)),        # weights/biases stay
            pl.BlockSpec(b1.shape, lambda i: (0, 0)),        # VMEM-resident across
            pl.BlockSpec(w2.shape, lambda i: (0, 0)),        # grid iterations
            pl.BlockSpec(b2.shape, lambda i: (0, 0)),
            pl.BlockSpec(w3.shape, lambda i: (0, 0)),
            pl.BlockSpec(b3.shape, lambda i: (0, 0)),
        ],
        out_specs=pl.BlockSpec((TM, PAD_N), lambda i: (i, 0)),
        compiler_params=pltpu.CompilerParams(
            dimension_semantics=("parallel",),   # shard batch tiles across TCs
            vmem_limit_bytes=8 << 20,            # ~3 MiB working set + headroom
        ),
        cost_estimate=cost,
    )(x2d, w1, b1, w2, b2, w3, b3)

    return out[:B, :N_CLASSES]


def init_params(key):
    """Deterministic init mimicking nn.Linear default (U(-1/sqrt(fan_in), +))."""
    dims = [(IN_DIM, H1), (H1, H2), (H2, N_CLASSES)]
    params = []
    for fan_in, fan_out in dims:
        kw, kb, key = jax.random.split(key, 3)
        bound = 1.0 / jnp.sqrt(fan_in)
        # stored as (in, out): equivalent to PyTorch's W.T
        w = jax.random.uniform(kw, (fan_in, fan_out), jnp.float32, -bound, bound)
        # biases kept 2-D (1, out) for clean TPU lane layout / broadcasting
        b = jax.random.uniform(kb, (1, fan_out), jnp.float32, -bound, bound)
        params += [w, b]
    return tuple(params)


if __name__ == "__main__":
    key = jax.random.PRNGKey(0)
    kx, kp = jax.random.split(key)

    B = 8
    x = jax.random.normal(kx, (B, 1, 28, 28), jnp.float32)   # NCHW MNIST-like
    params = init_params(kp)
    prepped = prepare_params(params)

    out = classifier_forward(x, prepped)
    out = jax.block_until_ready(out)

    # reference mirrors the kernel's bf16-weight / f32-accumulate arithmetic
    w1, b1, w2, b2, w3, b3 = params
    x2d = x.reshape(B, -1)
    h = jnp.maximum(
        jnp.dot(x2d.astype(jnp.bfloat16), w1.astype(jnp.bfloat16),
                preferred_element_type=jnp.float32) + b1, 0.0)
    h = jnp.maximum(
        jnp.dot(h.astype(jnp.bfloat16), w2.astype(jnp.bfloat16),
                preferred_element_type=jnp.float32) + b2, 0.0)
    logits = jnp.dot(h.astype(jnp.bfloat16), w3.astype(jnp.bfloat16),
                     preferred_element_type=jnp.float32) + b3
    ref = jax.nn.log_softmax(logits, axis=1)

    assert out.shape == (B, N_CLASSES)
    assert jnp.allclose(out, ref, atol=2e-3, rtol=2e-3), "mismatch vs reference"

    print("KERNEL_OK")
</pallas_src>

<mosaic_0001>
module attributes {stable_mosaic.version = 11 : i64} {
  func.func @mlp_kernel(%arg0: i32, %arg1: memref<8x784xf32, #tpu.memory_space<vmem>>, %arg2: memref<784x256xbf16, #tpu.memory_space<vmem>>, %arg3: memref<1x256xf32, #tpu.memory_space<vmem>>, %arg4: memref<256x128xbf16, #tpu.memory_space<vmem>>, %arg5: memref<1x128xf32, #tpu.memory_space<vmem>>, %arg6: memref<128x128xbf16, #tpu.memory_space<vmem>>, %arg7: memref<1x128xf32, #tpu.memory_space<vmem>>, %arg8: memref<8x128xf32, #tpu.memory_space<vmem>>) attributes {dimension_semantics = [#tpu.dimension_semantics<parallel>], iteration_bounds = array<i64: 1>, scalar_prefetch = 0 : i64, scratch_operands = 0 : i64, tpu.core_type = #tpu.core_type<tc>, window_params = [{transform_indices = @transform_0, window_bounds = array<i64: 8, 784>}, {pipeline_mode = #tpu.pipeline_mode<synchronous>, transform_indices = @transform_1, window_bounds = array<i64: 784, 256>}, {pipeline_mode = #tpu.pipeline_mode<synchronous>, transform_indices = @transform_2, window_bounds = array<i64: 1, 256>}, {pipeline_mode = #tpu.pipeline_mode<synchronous>, transform_indices = @transform_3, window_bounds = array<i64: 256, 128>}, {pipeline_mode = #tpu.pipeline_mode<synchronous>, transform_indices = @transform_4, window_bounds = array<i64: 1, 128>}, {pipeline_mode = #tpu.pipeline_mode<synchronous>, transform_indices = @transform_5, window_bounds = array<i64: 128, 128>}, {pipeline_mode = #tpu.pipeline_mode<synchronous>, transform_indices = @transform_6, window_bounds = array<i64: 1, 128>}, {transform_indices = @transform_7, window_bounds = array<i64: 8, 128>}]} {
    %c0 = arith.constant 0 : index
    %c0_0 = arith.constant 0 : index
    %0 = vector.load %arg1[%c0, %c0_0] : memref<8x784xf32, #tpu.memory_space<vmem>>, vector<8x784xf32>
    %1 = arith.truncf %0 : vector<8x784xf32> to vector<8x784xbf16>
    %c0_1 = arith.constant 0 : index
    %c0_2 = arith.constant 0 : index
    %2 = vector.load %arg2[%c0_1, %c0_2] : memref<784x256xbf16, #tpu.memory_space<vmem>>, vector<784x256xbf16>
    %cst = arith.constant dense<0.000000e+00> : vector<8x256xf32>
    %3 = tpu.matmul %1, %2, %cst {dimension_numbers = #tpu.dot_dimension_numbers<[1], [0], [0], [1], [0, 0, 1, 1], [], []>} : vector<8x784xbf16>, vector<784x256xbf16>, vector<8x256xf32> -> vector<8x256xf32>
    %c0_3 = arith.constant 0 : index
    %c0_4 = arith.constant 0 : index
    %4 = vector.load %arg3[%c0_3, %c0_4] : memref<1x256xf32, #tpu.memory_space<vmem>>, vector<1x256xf32>
    %5 = vector.broadcast %4 : vector<1x256xf32> to vector<8x256xf32>
    %6 = arith.addf %3, %5 : vector<8x256xf32>
    %cst_5 = arith.constant 0.000000e+00 : f32
    %7 = vector.broadcast %cst_5 : f32 to vector<8x256xf32>
    %8 = arith.maximumf %6, %7 : vector<8x256xf32>
    %9 = arith.truncf %8 : vector<8x256xf32> to vector<8x256xbf16>
    %c0_6 = arith.constant 0 : index
    %c0_7 = arith.constant 0 : index
    %10 = vector.load %arg4[%c0_6, %c0_7] : memref<256x128xbf16, #tpu.memory_space<vmem>>, vector<256x128xbf16>
    %cst_8 = arith.constant dense<0.000000e+00> : vector<8x128xf32>
    %11 = tpu.matmul %9, %10, %cst_8 {dimension_numbers = #tpu.dot_dimension_numbers<[1], [0], [0], [1], [0, 0, 1, 1], [], []>} : vector<8x256xbf16>, vector<256x128xbf16>, vector<8x128xf32> -> vector<8x128xf32>
    %c0_9 = arith.constant 0 : index
    %c0_10 = arith.constant 0 : index
    %12 = vector.load %arg5[%c0_9, %c0_10] : memref<1x128xf32, #tpu.memory_space<vmem>>, vector<1x128xf32>
    %13 = vector.broadcast %12 : vector<1x128xf32> to vector<8x128xf32>
    %14 = arith.addf %11, %13 : vector<8x128xf32>
    %cst_11 = arith.constant 0.000000e+00 : f32
    %15 = vector.broadcast %cst_11 : f32 to vector<8x128xf32>
    %16 = arith.maximumf %14, %15 : vector<8x128xf32>
    %17 = arith.truncf %16 : vector<8x128xf32> to vector<8x128xbf16>
    %c0_12 = arith.constant 0 : index
    %c0_13 = arith.constant 0 : index
    %18 = vector.load %arg6[%c0_12, %c0_13] : memref<128x128xbf16, #tpu.memory_space<vmem>>, vector<128x128xbf16>
    %cst_14 = arith.constant dense<0.000000e+00> : vector<8x128xf32>
    %19 = tpu.matmul %17, %18, %cst_14 {dimension_numbers = #tpu.dot_dimension_numbers<[1], [0], [0], [1], [0, 0, 1, 1], [], []>} : vector<8x128xbf16>, vector<128x128xbf16>, vector<8x128xf32> -> vector<8x128xf32>
    %c0_15 = arith.constant 0 : index
    %c0_16 = arith.constant 0 : index
    %20 = vector.load %arg7[%c0_15, %c0_16] : memref<1x128xf32, #tpu.memory_space<vmem>>, vector<1x128xf32>
    %21 = vector.broadcast %20 : vector<1x128xf32> to vector<8x128xf32>
    %22 = arith.addf %19, %21 : vector<8x128xf32>
    %cst_17 = arith.constant dense<0xFF800000> : vector<8xf32>
    %23 = vector.multi_reduction <maximumf>, %22, %cst_17 [1] : vector<8x128xf32> to vector<8xf32>
    %24 = vector.shape_cast %23 : vector<8xf32> to vector<8x1xf32>
    %25 = vector.broadcast %24 : vector<8x1xf32> to vector<8x128xf32>
    %26 = arith.subf %22, %25 : vector<8x128xf32>
    %27 = math.exp %26 : vector<8x128xf32>
    %cst_18 = arith.constant dense<0.000000e+00> : vector<8xf32>
    %28 = vector.multi_reduction <add>, %27, %cst_18 [1] : vector<8x128xf32> to vector<8xf32>
    %29 = vector.shape_cast %28 : vector<8xf32> to vector<8x1xf32>
    %30 = math.log %29 : vector<8x1xf32>
    %31 = vector.broadcast %30 : vector<8x1xf32> to vector<8x128xf32>
    %32 = arith.subf %26, %31 : vector<8x128xf32>
    %c0_19 = arith.constant 0 : index
    %c0_20 = arith.constant 0 : index
    %33 = vector.load %arg8[%c0_19, %c0_20] : memref<8x128xf32, #tpu.memory_space<vmem>>, vector<8x128xf32>
    tpu.vector_store %arg8[%c0_19, %c0_20], %32 {strides = array<i32>} : memref<8x128xf32, #tpu.memory_space<vmem>>, vector<8x128xf32>,
    return
  }
  func.func @transform_0(%arg0: i32) -> (i32, i32) {
    %c0_i32 = arith.constant 0 : i32
    %c0_i32_0 = arith.constant 0 : i32
    return %arg0, %c0_i32 : i32, i32
  }
  func.func @transform_1(%arg0: i32) -> (i32, i32) {
    %c0_i32 = arith.constant 0 : i32
    %c0_i32_0 = arith.constant 0 : i32
    %c0_i32_1 = arith.constant 0 : i32
    return %c0_i32, %c0_i32_0 : i32, i32
  }
  func.func @transform_2(%arg0: i32) -> (i32, i32) {
    %c0_i32 = arith.constant 0 : i32
    %c0_i32_0 = arith.constant 0 : i32
    %c0_i32_1 = arith.constant 0 : i32
    return %c0_i32, %c0_i32_0 : i32, i32
  }
  func.func @transform_3(%arg0: i32) -> (i32, i32) {
    %c0_i32 = arith.constant 0 : i32
    %c0_i32_0 = arith.constant 0 : i32
    %c0_i32_1 = arith.constant 0 : i32
    return %c0_i32, %c0_i32_0 : i32, i32
  }
  func.func @transform_4(%arg0: i32) -> (i32, i32) {
    %c0_i32 = arith.constant 0 : i32
    %c0_i32_0 = arith.constant 0 : i32
    %c0_i32_1 = arith.constant 0 : i32
    return %c0_i32, %c0_i32_0 : i32, i32
  }
  func.func @transform_5(%arg0: i32) -> (i32, i32) {
    %c0_i32 = arith.constant 0 : i32
    %c0_i32_0 = arith.constant 0 : i32
    %c0_i32_1 = arith.constant 0 : i32
    return %c0_i32, %c0_i32_0 : i32, i32
  }
  func.func @transform_6(%arg0: i32) -> (i32, i32) {
    %c0_i32 = arith.constant 0 : i32
    %c0_i32_0 = arith.constant 0 : i32
    %c0_i32_1 = arith.constant 0 : i32
    return %c0_i32, %c0_i32_0 : i32, i32
  }
  func.func @transform_7(%arg0: i32) -> (i32, i32) {
    %c0_i32 = arith.constant 0 : i32
    %c0_i32_0 = arith.constant 0 : i32
    return %arg0, %c0_i32 : i32, i32
  }
}

</mosaic_0001>

<bundles_post_ra>
// kernel: tpu_custom_call.1
= control target key start
LH: loop header
LB: loop body
LE: loop exit
PB: predicated region body
PF: predicated region fallthrough
CT: control target
= control target key end

     0   :  { %12 = vsyncpa [#allocation3], 0  ;;  %s1797_s0 = inlined_call_operand.hbm [shape: f32[8,784], index: 0, kind: input, shape index: {}]   ;;  %s1798_s1 = inlined_call_operand.hbm [shape: bf16[784,256], index: 1, kind: input, shape index: {}]   ;;  %s1799_s2 = inlined_call_operand.vmem [shape: f32[1,256], index: 2, kind: input, shape index: {}]   ;;  %s1800_s3 = inlined_call_operand.hbm [shape: bf16[256,128], index: 3, kind: input, shape index: {}]   ;;  %s1801_s4 = inlined_call_operand.vmem [shape: f32[1,128], index: 4, kind: input, shape index: {}]   ;;  %s1802_s5 = inlined_call_operand.hbm [shape: bf16[128,128], index: 5, kind: input, shape index: {}]   ;;  %s1803_s6 = inlined_call_operand.vmem [shape: f32[1,128], index: 6, kind: input, shape index: {}]   ;;  %s1804_s7 = inlined_call_operand.hbm [shape: f32[8,128], index: 7, kind: output, shape index: {}]  }
   0x1   :  { %13 = vsyncpa [#allocation6], 0 }
   0x2   :  { %14 = vsyncpa [#allocation9], 0 }
   0x3   :  { %15 = vsyncpa [#allocation4], 0  ;;  %s1676_s24 = smov [#allocation5]   ;;  %s1558_s28 = scalar_lea.hbm %s1798_s1, 12544 }
   0x4   :  { %s31_s25 = sshll.u32 %s1676_s24, 4  ;;  %p1559_p0 = scmp.ne.s32.totalorder %s1798_s1, %s1558_s28  ;;  %s32_s25 = int_to_ptr.vmem [resolvable:$true] %s31_s25 }
   0x5   :  { %p1562_p1 = scmp.lt.u32.totalorder %s1558_s28, %s1798_s1 }
   0x7   :  { %p1564_p2 = pnand %p1562_p1, %p1559_p0 }
   0x9   :  { %1567 = shalt.err (!%p1564_p2)
}
   0xa   :  { %s1568_s10 = scalar_lea.vmem %s32_s25, 12544  ;;  %p1573_p4 = scmp.lt.s32.totalorder %s32_s25, %s32_s25 }
   0xb   :  { %p1569_p3 = scmp.ne.s32.totalorder %s32_s25, %s1568_s10  ;;  %p1574_p5 = scmp.lt.s32.totalorder %s1568_s10, %s1568_s10 }
   0xd   :  { %p1575_p6 = por %p1574_p5, %p1573_p4 }
   0xf   :  { %p1576_p7 = pnand %p1575_p6, %p1569_p3 }
  0x11   :  { %1579 = shalt.err (!%p1576_p7)
}
  0x12   :  { %s1677_s11 = smov 128   ;;  %s1678_s12 = smov 8  }
  0x13   :  { %37 = dma.hbm_to_vmem [thread:$0]  %s1798_s1, 12544, %s32_s25, [#allocation6], %s1677_s11, %s1677_s11, %s1678_s12  }
  0x14   :  { %s1679_s15 = smov [#allocation2]   ;;  %s1680_s17 = smov [#allocation7]  }
  0x15   :  { %s22_s16 = sshll.u32 %s1679_s15, 4  ;;  %s45_s18 = sshll.u32 %s1680_s17, 4  ;;  %s23_s16 = int_to_ptr.vmem [resolvable:$true] %s22_s16  ;;  %s46_s18 = int_to_ptr.vmem [resolvable:$true] %s45_s18 }
  0x16   :  { %s1580_s21 = scalar_lea.hbm %s1797_s0, 896 }
  0x17   :  { %p1581_p8 = scmp.ne.s32.totalorder %s1797_s0, %s1580_s21  ;;  %p1584_p9 = scmp.lt.u32.totalorder %s1580_s21, %s1797_s0 }
  0x19   :  { %p1586_p10 = pnand %p1584_p9, %p1581_p8 }
  0x1b   :  { %1589 = shalt.err (!%p1586_p10)
}
  0x1c   :  { %s1590_s1 = scalar_lea.vmem %s23_s16, 896  ;;  %p1595_p12 = scmp.lt.s32.totalorder %s23_s16, %s23_s16 }
  0x1d   :  { %p1591_p11 = scmp.ne.s32.totalorder %s23_s16, %s1590_s1  ;;  %p1596_p13 = scmp.lt.s32.totalorder %s1590_s1, %s1590_s1 }
  0x1f   :  { %p1597_p0 = por %p1596_p13, %p1595_p12 }
  0x21   :  { %p1598_p1 = pnand %p1597_p0, %p1591_p11 }
  0x23   :  { %1601 = shalt.err (!%p1598_p1)
}
  0x24   :  { %25 = dma.hbm_to_vmem [thread:$0]  %s1797_s0, 896, %s23_s16, [#allocation3]  }
  0x25   :  { %s1602_s30 = scalar_lea.hbm %s1800_s3, 2048 }
  0x26   :  { %p1603_p2 = scmp.ne.s32.totalorder %s1800_s3, %s1602_s30  ;;  %p1606_p3 = scmp.lt.u32.totalorder %s1602_s30, %s1800_s3 }
  0x28   :  { %p1608_p4 = pnand %p1606_p3, %p1603_p2 }
  0x2a   :  { %1611 = shalt.err (!%p1608_p4)
}
  0x2b   :  { %s1612_s12 = scalar_lea.vmem %s46_s18, 2048  ;;  %p1617_p6 = scmp.lt.s32.totalorder %s46_s18, %s46_s18 }
  0x2c   :  { %p1613_p5 = scmp.ne.s32.totalorder %s46_s18, %s1612_s12  ;;  %p1618_p7 = scmp.lt.s32.totalorder %s1612_s12, %s1612_s12 }
  0x2e   :  { %p1619_p8 = por %p1618_p7, %p1617_p6 }
  0x30   :  { %p1620_p9 = pnand %p1619_p8, %p1613_p5 }
  0x32   :  { %1623 = shalt.err (!%p1620_p9)
}
  0x33   :  { %s1681_s0 = smov 64   ;;  %s1682_s13 = smov 4  }
  0x34   :  { %51 = dma.hbm_to_vmem [thread:$0]  %s1800_s3, 2048, %s46_s18, [#allocation6], %s1681_s0, %s1681_s0, %s1682_s13  }
  0x35   :  { %s1683_s16 = smov [#allocation8]   ;;  %s1624_s21 = scalar_lea.hbm %s1802_s5, 1024 }
  0x36   :  { %s59_s17 = sshll.u32 %s1683_s16, 4  ;;  %p1625_p10 = scmp.ne.s32.totalorder %s1802_s5, %s1624_s21  ;;  %s60_s17 = int_to_ptr.vmem [resolvable:$true] %s59_s17 }
  0x37   :  { %p1628_p11 = scmp.lt.u32.totalorder %s1624_s21, %s1802_s5 }
  0x39   :  { %p1630_p12 = pnand %p1628_p11, %p1625_p10 }
  0x3b   :  { %1633 = shalt.err (!%p1630_p12)
}
  0x3c   :  { %s1634_s1 = scalar_lea.vmem %s60_s17, 1024  ;;  %p1639_p0 = scmp.lt.s32.totalorder %s60_s17, %s60_s17 }
  0x3d   :  { %p1635_p13 = scmp.ne.s32.totalorder %s60_s17, %s1634_s1  ;;  %p1640_p1 = scmp.lt.s32.totalorder %s1634_s1, %s1634_s1 }
  0x3f   :  { %p1641_p2 = por %p1640_p1, %p1639_p0 }
  0x41   :  { %p1642_p3 = pnand %p1641_p2, %p1635_p13 }
  0x43   :  { %1645 = shalt.err (!%p1642_p3)
}
  0x44   :  { %65 = dma.hbm_to_vmem [thread:$0]  %s1802_s5, 1024, %s60_s17, [#allocation9], %s1681_s0, %s1681_s0, %s1682_s13  }
  0x45   :  { %1668 = dma.done.wait [#allocation3], 896  }
  0x46   :  { %1669 = vsyncadd [#allocation3], 4294966400 }
  0x47   :  { %1670 = dma.done.wait [#allocation6], 14592  }
  0x48   :  { %1671 = vsyncadd [#allocation6], 4294952704 }
  0x49   :  { %1672 = dma.done.wait [#allocation9], 1024  }
  0x4a   :  { %1673 = vsyncadd [#allocation9], 4294966272  ;;  %v1383_v0 = vld [vmem:[#allocation5 + $0x104] ss:$8 sps:$4 sm:$0xff]   ;;  %v1385_v1 = vld [vmem:[#allocation5 + $0x100] ss:$8 sps:$4 sm:$0xff]  }
  0x4b   :  { %740 = vmatprep.subr.bf16.mxu0 %v1383_v0  ;;  %v1386_v2 = vld [vmem:[#allocation5 + $0x114] ss:$8 sps:$4 sm:$0xff]   ;;  %v1388_v3 = vld [vmem:[#allocation5 + $0x110] ss:$8 sps:$4 sm:$0xff]   ;;  %v1389_v4 = vld [vmem:[#allocation5 + $0x124] ss:$8 sps:$4 sm:$0xff]  }
  0x4c   :  { %741 = vmatpush1.bf16.msra.mxu0 %v1385_v1  ;;  %v1391_v5 = vld [vmem:[#allocation5 + $0x120] ss:$8 sps:$4 sm:$0xff]   ;;  %v1392_v6 = vld [vmem:[#allocation5 + $0x134] ss:$8 sps:$4 sm:$0xff]   ;;  %v1394_v7 = vld [vmem:[#allocation5 + $0x130] ss:$8 sps:$4 sm:$0xff]  }
  0x4d   :  { %742 = vmatprep.subr.bf16.mxu0 %v1386_v2  ;;  %v1395_v8 = vld [vmem:[#allocation5 + $0x144] ss:$8 sps:$4 sm:$0xff]   ;;  %v1397_v9 = vld [vmem:[#allocation5 + $0x140] ss:$8 sps:$4 sm:$0xff]   ;;  %v1398_v10 = vld [vmem:[#allocation5 + $0x154] ss:$8 sps:$4 sm:$0xff]  }
  0x4e   :  { %v1400_v11 = vld [vmem:[#allocation5 + $0x150] ss:$8 sps:$4 sm:$0xff]   ;;  %v1401_v12 = vld [vmem:[#allocation5 + $0x164] ss:$8 sps:$4 sm:$0xff]   ;;  %v1403_v15 = vld [vmem:[#allocation5 + $0x160] ss:$8 sps:$4 sm:$0xff]  }
  0x4f   :  { %v84_v13 = vld [vmem:[#allocation2 + $0x18] sm:$0xff]  ;;  %v1404_v16 = vld [vmem:[#allocation5 + $0x174] ss:$8 sps:$4 sm:$0xff]   ;;  %v1406_v18 = vld [vmem:[#allocation5 + $0x170] ss:$8 sps:$4 sm:$0xff]   ;;  %vm695_vm0 = vcmask 130048  }
  0x50   :  { %743 = vmatpush1.bf16.msra.mxu0 %v1388_v3  ;;  %v91_v14 = vpack.c.bf16 %v84_v13, %v84_v13  ;;  %v1437_v17 = vld [vmem:[#allocation5 + $0x4] ss:$8 sps:$4 sm:$0xff]   ;;  %v1442_v20 = vld [vmem:[#allocation5] ss:$8 sps:$4 sm:$0xff]   ;;  %v1443_v21 = vld [vmem:[#allocation5 + $0x14] ss:$8 sps:$4 sm:$0xff]  }
  0x51   :  { %744 = vmatprep.subr.bf16.mxu0 %v1389_v4  ;;  %v1407_v19 = vld [vmem:[#allocation5 + $0x184] ss:$8 sps:$4 sm:$0xff]   ;;  %699 = vmatprep.subr.bf16.mxu1 %v1437_v17  ;;  %v1448_v22 = vld [vmem:[#allocation5 + $0x10] ss:$8 sps:$4 sm:$0xff]   ;;  %v1409_v24 = vld [vmem:[#allocation5 + $0x180] ss:$8 sps:$4 sm:$0xff]  }
  0x52   :  { %772 = vmatprep.mubr.bf16.mxu0 %v91_v14  ;;  %700 = vmatpush1.bf16.msra.mxu1 %v1442_v20  ;;  %v1449_v23 = vld [vmem:[#allocation5 + $0x24] ss:$8 sps:$4 sm:$0xff]   ;;  %v1410_v25 = vld [vmem:[#allocation5 + $0x194] ss:$8 sps:$4 sm:$0xff]   ;;  %v1454_v26 = vld [vmem:[#allocation5 + $0x20] ss:$8 sps:$4 sm:$0xff]  }
  0x53   :  { %701 = vmatprep.subr.bf16.mxu1 %v1443_v21  ;;  %v1455_v27 = vld [vmem:[#allocation5 + $0x34] ss:$8 sps:$4 sm:$0xff]   ;;  %v1412_v28 = vld [vmem:[#allocation5 + $0x190] ss:$8 sps:$4 sm:$0xff]   ;;  %v1413_v29 = vld [vmem:[#allocation5 + $0x1a4] ss:$8 sps:$4 sm:$0xff]  }
  0x54   :  { %745 = vmatpush1.bf16.msra.mxu0 %v1391_v5  ;;  %v1460_v30 = vld [vmem:[#allocation5 + $0x30] ss:$8 sps:$4 sm:$0xff]   ;;  %v1461_v31 = vld [vmem:[#allocation5 + $0x44] ss:$8 sps:$4 sm:$0xff]   ;;  %v1415_v32 = vld [vmem:[#allocation5 + $0x1a0] ss:$8 sps:$4 sm:$0xff]  }
  0x55   :  { %746 = vmatprep.subr.bf16.mxu0 %v1392_v6  ;;  %v1416_v33 = vld [vmem:[#allocation5 + $0x1b4] ss:$8 sps:$4 sm:$0xff]   ;;  %v1466_v34 = vld [vmem:[#allocation5 + $0x40] ss:$8 sps:$4 sm:$0xff]   ;;  %v1418_v36 = vld [vmem:[#allocation5 + $0x1b0] ss:$8 sps:$4 sm:$0xff]  }
  0x56   :  { %702 = vmatpush1.bf16.msra.mxu1 %v1448_v22  ;;  %v1467_v35 = vld [vmem:[#allocation5 + $0x54] ss:$8 sps:$4 sm:$0xff]   ;;  %v1419_v37 = vld [vmem:[#allocation5 + $0x1c4] ss:$8 sps:$4 sm:$0xff]   ;;  %v1472_v38 = vld [vmem:[#allocation5 + $0x50] ss:$8 sps:$4 sm:$0xff]  }
  0x57   :  { %703 = vmatprep.subr.bf16.mxu1 %v1449_v23  ;;  %v1473_v39 = vld [vmem:[#allocation5 + $0x64] ss:$8 sps:$4 sm:$0xff]   ;;  %v1421_v40 = vld [vmem:[#allocation5 + $0x1c0] ss:$8 sps:$4 sm:$0xff]   ;;  %v1422_v41 = vld [vmem:[#allocation5 + $0x1d4] ss:$8 sps:$4 sm:$0xff]  }
  0x58   :  { %747 = vmatpush1.bf16.msra.mxu0 %v1394_v7  ;;  %v1478_v42 = vld [vmem:[#allocation5 + $0x60] ss:$8 sps:$4 sm:$0xff]   ;;  %v1479_v43 = vld [vmem:[#allocation5 + $0x74] ss:$8 sps:$4 sm:$0xff]   ;;  %v1424_v44 = vld [vmem:[#allocation5 + $0x1d0] ss:$8 sps:$4 sm:$0xff]  }
  0x59   :  { %748 = vmatprep.subr.bf16.mxu0 %v1395_v8  ;;  %v1425_v45 = vld [vmem:[#allocation5 + $0x1e4] ss:$8 sps:$4 sm:$0xff]   ;;  %v1484_v46 = vld [vmem:[#allocation5 + $0x70] ss:$8 sps:$4 sm:$0xff]   ;;  %v1427_v48 = vld [vmem:[#allocation5 + $0x1e0] ss:$8 sps:$4 sm:$0xff]  }
  0x5a   :  { %704 = vmatpush1.bf16.msra.mxu1 %v1454_v26  ;;  %v1485_v47 = vld [vmem:[#allocation5 + $0x84] ss:$8 sps:$4 sm:$0xff]   ;;  %v1428_v49 = vld [vmem:[#allocation5 + $0x1f4] ss:$8 sps:$4 sm:$0xff]   ;;  %v1490_v50 = vld [vmem:[#allocation5 + $0x80] ss:$8 sps:$4 sm:$0xff]  }
  0x5b   :  { %705 = vmatprep.subr.bf16.mxu1 %v1455_v27  ;;  %v1430_v51 = vld [vmem:[#allocation5 + $0x1f0] ss:$8 sps:$4 sm:$0xff]   ;;  %v1491_v52 = vld [vmem:[#allocation5 + $0x94] ss:$8 sps:$4 sm:$0xff]   ;;  %v1433_v54 = vld [vmem:[#allocation5 + $0x204] ss:$8 sps:$4 sm:$0xff]  }
  0x5c   :  { %749 = vmatpush1.bf16.msra.mxu0 %v1397_v9  ;;  %v83_v53 = vld [vmem:[#allocation2 + $0x10] sm:$0xff]  ;;  %v1497_v56 = vld [vmem:[#allocation5 + $0xa4] ss:$8 sps:$4 sm:$0xff]   ;;  %v86_v58 = vld [vmem:[#allocation2 + $0x28] sm:$0xff]  ;;  %vm1686_vm1 = vmmov 0  }
  0x5d   :  { %750 = vmatprep.subr.bf16.mxu0 %v1398_v10  ;;  %v1496_v55 = vld [vmem:[#allocation5 + $0x90] ss:$8 sps:$4 sm:$0xff]   ;;  %v90_v57 = vpack.c.bf16 %v83_v53, %v83_v53  ;;  %v1431_v59 = vld [vmem:[#allocation5 + $0x200] ss:$8 sps:$4 sm:$0xff]   ;;  %v93_v60 = vpack.c.bf16 %v86_v58, %v86_v58  ;;  %v1436_v61 = vld [vmem:[#allocation5 + $0x214] ss:$8 sps:$4 sm:$0xff]  }
  0x5e   :  { %706 = vmatpush1.bf16.msra.mxu1 %v1460_v30  ;;  %v1502_v62 = vld [vmem:[#allocation5 + $0xa0] ss:$8 sps:$4 sm:$0xff]   ;;  %v1503_v63 = vld [vmem:[#allocation5 + $0xb4] ss:$8 sps:$4 sm:$0xff]   ;;  %v1434_v1 = vld [vmem:[#allocation5 + $0x210] ss:$8 sps:$4 sm:$0xff]  }
  0x5f   :  { %707 = vmatprep.subr.bf16.mxu1 %v1461_v31  ;;  %v82_v0 = vld [vmem:[#allocation2 + $0x8] sm:$0xff]  ;;  %v1441_v3 = vld [vmem:[#allocation5 + $0x224] ss:$8 sps:$4 sm:$0xff]   ;;  %v1439_v6 = vld [vmem:[#allocation5 + $0x220] ss:$8 sps:$4 sm:$0xff]  }
  0x60   :  { %751 = vmatpush1.bf16.msra.mxu0 %v1400_v11  ;;  %v89_v2 = vpack.c.bf16 %v82_v0, %v82_v0  ;;  %v1508_v4 = vld [vmem:[#allocation5 + $0xb0] ss:$8 sps:$4 sm:$0xff]   ;;  %v1509_v5 = vld [vmem:[#allocation5 + $0xc4] ss:$8 sps:$4 sm:$0xff]   ;;  %v1447_v7 = vld [vmem:[#allocation5 + $0x234] ss:$8 sps:$4 sm:$0xff]  }
  0x61   :  { %752 = vmatprep.subr.bf16.mxu0 %v1401_v12  ;;  %v1514_v8 = vld [vmem:[#allocation5 + $0xc0] ss:$8 sps:$4 sm:$0xff]   ;;  %v1515_v9 = vld [vmem:[#allocation5 + $0xd4] ss:$8 sps:$4 sm:$0xff]   ;;  %v1445_v10 = vld [vmem:[#allocation5 + $0x230] ss:$8 sps:$4 sm:$0xff]  }
  0x62   :  { %708 = vmatpush1.bf16.msra.mxu1 %v1466_v34  ;;  %731 = vmatprep.mubr.bf16.mxu1 %v89_v2  ;;  %v1453_v11 = vld [vmem:[#allocation5 + $0x244] ss:$8 sps:$4 sm:$0xff]   ;;  %v1451_v12 = vld [vmem:[#allocation5 + $0x240] ss:$8 sps:$4 sm:$0xff]   ;;  %v1520_v13 = vld [vmem:[#allocation5 + $0xd0] ss:$8 sps:$4 sm:$0xff]  }
  0x63   :  { %709 = vmatprep.subr.bf16.mxu1 %v1467_v35  ;;  %v1521_v14 = vld [vmem:[#allocation5 + $0xe4] ss:$8 sps:$4 sm:$0xff]   ;;  %v1527_v17 = vld [vmem:[#allocation5 + $0xf4] ss:$8 sps:$4 sm:$0xff]   ;;  %v1529_v20 = vld [vmem:[#allocation5 + $0xf0] ss:$8 sps:$4 sm:$0xff]  }
  0x64   :  { %753 = vmatpush1.bf16.msra.mxu0 %v1403_v15  ;;  %v1459_v15 = vld [vmem:[#allocation5 + $0x254] ss:$8 sps:$4 sm:$0xff]   ;;  %v81_v21 = vld [vmem:[#allocation2] sm:$0xff]  ;;  %v1534_v31 = vld [vmem:[#allocation7 + $0x50] sm:$0xff]  }
  0x65   :  { %754 = vmatprep.subr.bf16.mxu0 %v1404_v16  ;;  %v1526_v16 = vld [vmem:[#allocation5 + $0xe0] ss:$8 sps:$4 sm:$0xff]   ;;  %v1530_v22 = vld [vmem:[#allocation7 + $0x40] sm:$0xff]   ;;  %v1532_v27 = vld [vmem:[#allocation7 + $0x48] sm:$0xff]  }
  0x66   :  { %710 = vmatpush1.bf16.msra.mxu1 %v1472_v38  ;;  %v1463_v23 = vld [vmem:[#allocation5 + $0x260] ss:$8 sps:$4 sm:$0xff]   ;;  %v1531_v26 = vld [vmem:[#allocation7] sm:$0xff]   ;;  %v1533_v30 = vld [vmem:[#allocation7 + $0x8] sm:$0xff]  }
  0x67   :  { %711 = vmatprep.subr.bf16.mxu1 %v1473_v39  ;;  %v1535_v34 = vld [vmem:[#allocation7 + $0x10] sm:$0xff]   ;;  %v1536_v35 = vld [vmem:[#allocation7 + $0x58] sm:$0xff]   ;;  %v1538_v39 = vld [vmem:[#allocation7 + $0x60] sm:$0xff]  }
  0x68   :  { %755 = vmatpush1.bf16.msra.mxu0 %v1406_v18  ;;  %v1457_v18 = vld [vmem:[#allocation5 + $0x250] ss:$8 sps:$4 sm:$0xff]   ;;  %v1537_v38 = vld [vmem:[#allocation7 + $0x18] sm:$0xff]  }
  0x69   :  { %756 = vmatprep.subr.bf16.mxu0 %v1407_v19  ;;  %v1465_v19 = vld [vmem:[#allocation5 + $0x264] ss:$8 sps:$4 sm:$0xff]  }
  0x6a   :  { %712 = vmatpush1.bf16.msra.mxu1 %v1478_v42  ;;  %v1539_v42 = vld [vmem:[#allocation7 + $0x20] sm:$0xff]   ;;  %v1525_v53 = vld [vmem:[#allocation5 + $0x304] ss:$8 sps:$4 sm:$0xff]  }
  0x6b   :  { %713 = vmatprep.subr.bf16.mxu1 %v1479_v43  ;;  %v1493_v43 = vld [vmem:[#allocation5 + $0x2b0] ss:$8 sps:$4 sm:$0xff]   ;;  %v1545_v0 = vld [vmem:[#allocation7 + $0x38] sm:$0xff]  }
  0x6c   :  { %757 = vmatpush1.bf16.msra.mxu0 %v1409_v24  ;;  %v1471_v24 = vld [vmem:[#allocation5 + $0x274] ss:$8 sps:$4 sm:$0xff]  }
  0x6d   :  { %758 = vmatprep.subr.bf16.mxu0 %v1410_v25  ;;  %v88_v25 = vpack.c.bf16 %v81_v21, %v81_v21 }
  0x6e   :  { %714 = vmatpush1.bf16.msra.mxu1 %v1484_v46  ;;  %v1507_v46 = vld [vmem:[#allocation5 + $0x2d4] ss:$8 sps:$4 sm:$0xff]  }
  0x6f   :  { %715 = vmatprep.subr.bf16.mxu1 %v1485_v47  ;;  %v1505_v47 = vld [vmem:[#allocation5 + $0x2d0] ss:$8 sps:$4 sm:$0xff]  }
  0x70   :  { %759 = vmatpush1.bf16.msra.mxu0 %v1412_v28  ;;  %v1469_v28 = vld [vmem:[#allocation5 + $0x270] ss:$8 sps:$4 sm:$0xff]  }
  0x71   :  { %760 = vmatprep.subr.bf16.mxu0 %v1413_v29  ;;  %v1477_v29 = vld [vmem:[#allocation5 + $0x284] ss:$8 sps:$4 sm:$0xff]  }
  0x72   :  { %716 = vmatpush1.bf16.msra.mxu1 %v1490_v50  ;;  %v1519_v50 = vld [vmem:[#allocation5 + $0x2f4] ss:$8 sps:$4 sm:$0xff]  }
  0x73   :  { %717 = vmatprep.subr.bf16.mxu1 %v1491_v52  ;;  %v85_v52 = vld [vmem:[#allocation2 + $0x20] sm:$0xff] }
  0x74   :  { %761 = vmatpush1.bf16.msra.mxu0 %v1415_v32  ;;  %v1475_v32 = vld [vmem:[#allocation5 + $0x280] ss:$8 sps:$4 sm:$0xff]  }
  0x75   :  { %762 = vmatprep.subr.bf16.mxu0 %v1416_v33  ;;  %v1483_v33 = vld [vmem:[#allocation5 + $0x294] ss:$8 sps:$4 sm:$0xff]  }
  0x76   :  { %718 = vmatpush1.bf16.msra.mxu1 %v1496_v55  ;;  %v1523_v55 = vld [vmem:[#allocation5 + $0x300] ss:$8 sps:$4 sm:$0xff]  }
  0x77   :  { %719 = vmatprep.subr.bf16.mxu1 %v1497_v56  ;;  %v1684_v56 = vmov 0  }
  0x78   :  { %763 = vmatpush1.bf16.msra.mxu0 %v1418_v36  ;;  %v1481_v36 = vld [vmem:[#allocation5 + $0x290] ss:$8 sps:$4 sm:$0xff]  }
  0x79   :  { %764 = vmatprep.subr.bf16.mxu0 %v1419_v37  ;;  %v1489_v37 = vld [vmem:[#allocation5 + $0x2a4] ss:$8 sps:$4 sm:$0xff]  }
  0x7a   :  { %720 = vmatpush1.bf16.msra.mxu1 %v1502_v62  ;;  %v1543_v62 = vld [vmem:[#allocation7 + $0x30] sm:$0xff]  }
  0x7b   :  { %721 = vmatprep.subr.bf16.mxu1 %v1503_v63  ;;  %v1544_v63 = vld [vmem:[#allocation7 + $0x78] sm:$0xff]  }
  0x7c   :  { %765 = vmatpush1.bf16.msra.mxu0 %v1421_v40  ;;  %v1487_v40 = vld [vmem:[#allocation5 + $0x2a0] ss:$8 sps:$4 sm:$0xff]  }
  0x7d   :  { %766 = vmatprep.subr.bf16.mxu0 %v1422_v41  ;;  %v1495_v41 = vld [vmem:[#allocation5 + $0x2b4] ss:$8 sps:$4 sm:$0xff]  }
  0x7e   :  { %722 = vmatpush1.bf16.msra.mxu1 %v1508_v4 }
  0x7f   :  { %723 = vmatprep.subr.bf16.mxu1 %v1509_v5 }
  0x80   :  { %767 = vmatpush1.bf16.msra.mxu0 %v1424_v44  ;;  %v1501_v44 = vld [vmem:[#allocation5 + $0x2c4] ss:$8 sps:$4 sm:$0xff]  }
  0x81   :  { %768 = vmatprep.subr.bf16.mxu0 %v1425_v45  ;;  %v1499_v45 = vld [vmem:[#allocation5 + $0x2c0] ss:$8 sps:$4 sm:$0xff]  }
  0x82   :  { %724 = vmatpush1.bf16.msra.mxu1 %v1514_v8 }
  0x83   :  { %725 = vmatprep.subr.bf16.mxu1 %v1515_v9  ;;  %v193_v9 = vld [vmem:[%s1799_s2] sm:$0x3] }
  0x84   :  { %769 = vmatpush1.bf16.msra.mxu0 %v1427_v48  ;;  %v1513_v48 = vld [vmem:[#allocation5 + $0x2e4] ss:$8 sps:$4 sm:$0xff]  }
  0x85   :  { %770 = vmatprep.subr.bf16.mxu0 %v1428_v49  ;;  %v1511_v49 = vld [vmem:[#allocation5 + $0x2e0] ss:$8 sps:$4 sm:$0xff]  }
  0x86   :  { %726 = vmatpush1.bf16.msra.mxu1 %v1520_v13 }
  0x87   :  { %727 = vmatprep.subr.bf16.mxu1 %v1521_v14 }
  0x88   :  { %771 = vmatpush1.bf16.msra.mxu0 %v1430_v51  ;;  %v1517_v51 = vld [vmem:[#allocation5 + $0x2f0] ss:$8 sps:$4 sm:$0xff]  }
  0x89   :  { %781 = vmatprep.subr.bf16.mxu0 %v1433_v54  ;;  %v92_v54 = vpack.c.bf16 %v85_v52, %v85_v52 }
  0x8a   :  { %728 = vmatpush1.bf16.msra.mxu1 %v1526_v16 }
  0x8b   :  { %773 = vmatmul.mubr.bf16.vlgmr.msra.gmra.mrb[0].mxu0 %v90_v57  ;;  %729 = vmatprep.subr.bf16.mxu1 %v1527_v17  ;;  %v87_v57 = vld [vmem:[#allocation2 + $0x30] sm:$0xff] }
  0x8c   :  { %782 = vmatpush1.bf16.msra.mxu0 %v1431_v59  ;;  %813 = vmatprep.mubr.bf16.mxu0 %v93_v60  ;;  %v94_v58 = vpack.c.bf16 %v87_v57, %v87_v57  ;;  %v1540_v59 = vld [vmem:[#allocation7 + $0x68] sm:$0xff]  }
  0x8d   :  { %783 = vmatprep.subr.bf16.mxu0 %v1436_v61  ;;  %v1541_v60 = vld [vmem:[#allocation7 + $0x28] sm:$0xff]   ;;  %v1542_v61 = vld [vmem:[#allocation7 + $0x70] sm:$0xff]  }
  0x8e   :  { %730 = vmatpush1.bf16.msra.mxu1 %v1529_v20 }
  0x8f   :  { %1308 = vmatprep.subr.bf16.mxu1 %v1530_v22 }
  0x90   :  { %784 = vmatpush1.bf16.msra.mxu0 %v1434_v1  ;;  %v1685_v1 = vmov 0.0  }
  0x91   :  { %785 = vmatprep.subr.bf16.mxu0 %v1441_v3  ;;  %732 = vmatmul.mubr.bf16.vlgmr.msra.gmra.mrb[0].mxu1 %v88_v25 }
  0x92   :  { %1309 = vmatpush3.bf16.msra.mxu1 %v1531_v26  ;;  %v1547_v26 = vld [vmem:[#allocation8 + $0x8] sm:$0xff]  }
  0x93   :  { %1310 = vmatprep.subr.bf16.mxu1 %v1532_v27  ;;  %v1548_v27 = vld [vmem:[#allocation8 + $0x10] sm:$0xff]  }
  0x94   :  { %786 = vmatpush1.bf16.msra.mxu0 %v1439_v6  ;;  %v195_v6 = vlaneseq }
  0x95   :  { %787 = vmatprep.subr.bf16.mxu0 %v1447_v7 }
  0x96   :  { %1311 = vmatpush3.bf16.msra.mxu1 %v1533_v30  ;;  %v196_v7 = vshrl.u32 %v195_v6, 7  ;;  %v1551_v30 = vld [vmem:[#allocation8 + $0x28] sm:$0xff]  }
  0x97   :  { %1312 = vmatprep.subr.bf16.mxu1 %v1534_v31  ;;  %v1552_v31 = vld [vmem:[#allocation8 + $0x30] sm:$0xff]  }
  0x98   :  { %788 = vmatpush1.bf16.msra.mxu0 %v1445_v10  ;;  %v197_v8 = vsub.s32 0, %v196_v7  ;;  %v201_v10 = vsub.s32 1, %v196_v7 }
  0x99   :  { %789 = vmatprep.subr.bf16.mxu0 %v1453_v11 }
  0x9a   :  { %1313 = vmatpush3.bf16.msra.mxu1 %v1535_v34  ;;  %v198_v11 = vrot.slane %v193_v9, %v197_v8  ;;  %v1282_v34 = vld [vmem:[%s1801_s4] ss:$0 sm:$0xff]  ;;  %s1687_s4 = smov [#allocation10]  }
  0x9b   :  { %1314 = vmatprep.subr.bf16.mxu1 %v1536_v35  ;;  %s1172_s30 = sshll.u32 %s1687_s4, 4  ;;  %s1173_s30 = int_to_ptr.vmem [resolvable:$true] %s1172_s30 }
  0x9c   :  { %790 = vmatpush1.bf16.msra.mxu0 %v1451_v12  ;;  %v202_v12 = vrot.slane %v193_v9, %v201_v10  ;;  %p1651_p5 = scmp.lt.s32.totalorder %s1173_s30, %s1173_s30 }
  0x9d   :  { %791 = vmatprep.subr.bf16.mxu0 %v1459_v15 }
  0x9e   :  { %1315 = vmatpush3.bf16.msra.mxu1 %v1537_v38 }
  0x9f   :  { %1316 = vmatprep.subr.bf16.mxu1 %v1538_v39 }
  0xa0   :  { %792 = vmatpush1.bf16.msra.mxu0 %v1457_v18 }
  0xa1   :  { %793 = vmatprep.subr.bf16.mxu0 %v1465_v19 }
  0xa2   :  { %1317 = vmatpush3.bf16.msra.mxu1 %v1539_v42  ;;  %v1299_v42 = vld [vmem:[%s1803_s6] ss:$0 sm:$0xff]  ;;  %s1646_s6 = scalar_lea.vmem %s1173_s30, 128 }
  0xa3   :  { %1318 = vmatprep.subr.bf16.mxu1 %v1540_v59  ;;  %p1647_p4 = scmp.ne.s32.totalorder %s1173_s30, %s1646_s6  ;;  %p1652_p6 = scmp.lt.s32.totalorder %s1646_s6, %s1646_s6 }
  0xa4   :  { %794 = vmatpush1.bf16.msra.mxu0 %v1463_v23 }
  0xa5   :  { %795 = vmatprep.subr.bf16.mxu0 %v1471_v24  ;;  %v1546_v24 = vld [vmem:[#allocation8] sm:$0xff]   ;;  %p1653_p7 = por %p1652_p6, %p1651_p5 }
  0xa6   :  { %1319 = vmatpush3.bf16.msra.mxu1 %v1541_v60 }
  0xa7   :  { %1320 = vmatprep.subr.bf16.mxu1 %v1542_v61  ;;  %p1654_p8 = pnand %p1653_p7, %p1647_p4 }
  0xa8   :  { %796 = vmatpush1.bf16.msra.mxu0 %v1469_v28  ;;  %v1549_v28 = vld [vmem:[#allocation8 + $0x18] sm:$0xff]  }
  0xa9   :  { %797 = vmatprep.subr.bf16.mxu0 %v1477_v29  ;;  %v1550_v29 = vld [vmem:[#allocation8 + $0x20] sm:$0xff]  }
  0xaa   :  { %1321 = vmatpush3.bf16.msra.mxu1 %v1543_v62 }
  0xab   :  { %1322 = vmatprep.subr.bf16.mxu1 %v1544_v63 }
  0xac   :  { %798 = vmatpush1.bf16.msra.mxu0 %v1475_v32  ;;  %v1553_v32 = vld [vmem:[#allocation8 + $0x38] sm:$0xff]  }
  0xad   :  { %799 = vmatprep.subr.bf16.mxu0 %v1483_v33 }
  0xae   :  { %1323 = vmatpush3.bf16.msra.mxu1 %v1545_v0 }
  0xaf   :  { %1339 = vmatprep.subr.bf16.mxu1 %v1685_v1 }
  0xb0   :  { %800 = vmatpush1.bf16.msra.mxu0 %v1481_v36 }
  0xb1   :  { %801 = vmatprep.subr.bf16.mxu0 %v1489_v37 }
  0xb4   :  { %802 = vmatpush1.bf16.msra.mxu0 %v1487_v40 }
  0xb5   :  { %803 = vmatprep.subr.bf16.mxu0 %v1495_v41 }
  0xb8   :  { %804 = vmatpush1.bf16.msra.mxu0 %v1493_v43 }
  0xb9   :  { %805 = vmatprep.subr.bf16.mxu0 %v1501_v44 }
  0xbc   :  { %806 = vmatpush1.bf16.msra.mxu0 %v1499_v45 }
  0xbd   :  { %807 = vmatprep.subr.bf16.mxu0 %v1507_v46 }
  0xc0   :  { %808 = vmatpush1.bf16.msra.mxu0 %v1505_v47 }
  0xc1   :  { %809 = vmatprep.subr.bf16.mxu0 %v1513_v48 }
  0xc4   :  { %810 = vmatpush1.bf16.msra.mxu0 %v1511_v49 }
  0xc5   :  { %811 = vmatprep.subr.bf16.mxu0 %v1519_v50 }
  0xc8   :  { %812 = vmatpush1.bf16.msra.mxu0 %v1517_v51 }
  0xc9   :  { %822 = vmatprep.subr.bf16.mxu0 %v1525_v53 }
  0xcb   :  { %814 = vmatmul.mubr.bf16.vlgmr.msra.gmra.mrb[0].mxu0 %v92_v54 }
  0xcc   :  { %823 = vmatpush1.bf16.msra.mxu0 %v1523_v55  ;;  %854 = vmatprep.mubr.bf16.mxu0 %v1684_v56 }
  0xd7   :  { %1281 = vmatmul.mubr.msk.bf16.vlgmr.msra.gmra.mrb[0].mxu0 %vm695_vm0, %v94_v58 }
 0x164   :  { %v733_v2 = vpop.f32.mrb[0].mxu1 }
 0x165   :  { %v735_v3 = vpop.f32.mrb[1].mxu1  ;;  %v734_v13 = vadd.f32 %v733_v2, %v198_v11 }
 0x166   :  { %v737_v4 = vpop.f32.mrb[2].mxu1  ;;  %v736_v14 = vadd.f32 %v735_v3, %v202_v12 }
 0x167   :  { %v738_v5 = vpop.f32.mrb[3].mxu1 }
 0x1aa   :  { %v856_v15 = vpop.f32.mrb[0].mxu0 }
 0x1ab   :  { %v1360_v16 = vadd.f32 %v856_v15, %v734_v13  ;;  %v858_v17 = vpop.f32.mrb[1].mxu0 }
 0x1ac   :  { %v1362_v18 = vadd.f32 %v858_v17, %v736_v14  ;;  %v860_v19 = vpop.f32.mrb[2].mxu0 }
 0x1ad   :  { %v863_v20 = vmax.f32 %v1360_v16, 0.0  ;;  %v861_v21 = vpop.f32.mrb[3].mxu0 }
 0x1ae   :  { %v864_v22 = vmax.f32 %v1362_v18, 0.0 }
 0x1af   :  { %v865_v25 = vpack.c.bf16 %v863_v20, %v863_v20 }
 0x1b0   :  { %v866_v23 = vpack.c.bf16 %v864_v22, %v864_v22 }
 0x1b2   :  { %1034 = vmatprep.mubr.bf16.mxu1 %v866_v23 }
 0x1b3   :  { %1035 = vmatmul.mubr.bf16.vlgmr.msra.gmra.mrb[4].mxu1 %v865_v25 }
 0x1b4   :  { %1340 = vmatpush3.bf16.msra.mxu1 %v1546_v24  ;;  %1355 = vmatprep.mubr.msk.bf16.mxu1 %vm1686_vm1, %v1685_v1 }
 0x1b5   :  { %1341 = vmatprep.subr.bf16.mxu1 %v1685_v1 }
 0x1b8   :  { %1342 = vmatpush3.bf16.msra.mxu1 %v1547_v26 }
 0x1b9   :  { %1343 = vmatprep.subr.bf16.mxu1 %v1685_v1 }
 0x1bc   :  { %1344 = vmatpush3.bf16.msra.mxu1 %v1548_v27 }
 0x1bd   :  { %1345 = vmatprep.subr.bf16.mxu1 %v1685_v1 }
 0x1c0   :  { %1346 = vmatpush3.bf16.msra.mxu1 %v1549_v28 }
 0x1c1   :  { %1347 = vmatprep.subr.bf16.mxu1 %v1685_v1 }
 0x1c4   :  { %1348 = vmatpush3.bf16.msra.mxu1 %v1550_v29 }
 0x1c5   :  { %1349 = vmatprep.subr.bf16.mxu1 %v1685_v1 }
 0x1c8   :  { %1350 = vmatpush3.bf16.msra.mxu1 %v1551_v30 }
 0x1c9   :  { %1351 = vmatprep.subr.bf16.mxu1 %v1685_v1 }
 0x1cc   :  { %1352 = vmatpush3.bf16.msra.mxu1 %v1552_v31 }
 0x1cd   :  { %1353 = vmatprep.subr.bf16.mxu1 %v1685_v1 }
 0x1d0   :  { %1354 = vmatpush3.bf16.msra.mxu1 %v1553_v32 }
 0x286   :  { %v1324_v33 = vpop.f32.mrb[4].mxu1 }
 0x287   :  { %v1325_v35 = vpop.f32.mrb[5].mxu1 }
 0x288   :  { %v1326_v36 = vadd.f32 %v1325_v35, %v1324_v33  ;;  %v1327_v37 = vpop.f32.mrb[6].mxu1 }
 0x289   :  { %v1328_v38 = vpop.f32.mrb[7].mxu1 }
 0x28a   :  { %v1037_v39 = vadd.f32 %v1326_v36, %v1282_v34 }
 0x28c   :  { %v1042_v40 = vmax.f32 %v1037_v39, 0.0 }
 0x28e   :  { %v1043_v41 = vpack.c.bf16 %v1042_v40, %v1042_v40 }
 0x290   :  { %1356 = vmatmul.mubr.bf16.vlgmr.msra.gmra.mrb[8].mxu1 %v1043_v41 }
 0x363   :  { %v1149_v43 = vpop.f32.mrb[8].mxu1 }
 0x364   :  { %v1150_v44 = vadd.f32 %v1299_v42, %v1149_v43  ;;  %v1357_v45 = vpop.f32.mrb[9].mxu1 }
 0x365   :  { %v1152_v46 = vpop.f32.mrb[10].mxu1 }
 0x366   :  { %1155 = vmax.xlane.f32.xlu0 %v1150_v44  ;;  %v1358_v47 = vpop.f32.mrb[11].mxu1 }
 0x3f3   :  { %v1156_v48 = vpop.xlane.xlu0 %1155 }
 0x3f4   :  { %v1157_v49 = vsub.f32 %v1150_v44, %v1156_v48 }
 0x3f6   :  { %v1158_v50 = vmul.f32 1.442695, %v1157_v49 }
 0x3f8   :  { %1554 = vpow2.f32 %v1158_v50 }
 0x402   :  { %v1555_v51 = vpop.eup %1554 }
 0x403   :  { %1160 = vadd.xlane.f32.xlu0 %v1555_v51 }
 0x490   :  { %v1161_v52 = vpop.xlane.xlu0 %1160 }
 0x491   :  { %1556 = vlog2.f32 %v1161_v52 }
 0x49b   :  { %v1557_v53 = vpop.eup %1556 }
 0x49c   :  { %v1163_v54 = vmul.f32 0.6931472, %v1557_v53 }
 0x49e   :  { %v1164_v55 = vsub.f32 %v1157_v49, %v1163_v54 }
 0x4a0   :  { %1165 = vst [vmem:[#allocation10] sm:$0xff] %v1164_v55 }
 0x4a1   :  { %1657 = shalt.err (!%p1654_p8)
}
 0x4a2   :  { %s1658_s10 = scalar_lea.hbm %s1804_s7, 128 }
 0x4a3   :  { %p1659_p9 = scmp.ne.s32.totalorder %s1804_s7, %s1658_s10  ;;  %p1662_p10 = scmp.lt.u32.totalorder %s1658_s10, %s1804_s7 }
 0x4a5   :  { %p1664_p11 = pnand %p1662_p10, %p1659_p9 }
 0x4a7   :  { %1667 = shalt.err (!%p1664_p11)
}
 0x4a8   :  { %1175 = dma.vmem_to_hbm [thread:$0]  %s1173_s30, 128, %s1804_s7, [#allocation4]  }
 0x4a9   :  { %1674 = dma.done.wait [#allocation4], 128  }
 0x4aa   :  { %1675 = vsyncadd [#allocation4], 4294967168 }
 0x4ab   :  { %1179 = vsyncpa [#allocation3], 1 }
 0x4ac   :  { %1180 = vsyncpa [#allocation6], 1 }
 0x4ad   :  { %1181 = vsyncpa [#allocation9], 1 }
 0x4ae   :  { %1182 = vsyncpa [#allocation4], 1 }

</bundles_post_ra>
